<compile_context>
chip_gen: v6e
topology: v6e:2x2x1
jax: 0.10.0
libtpu: 0.0.40
codegen_flags: <defaults>
</compile_context>

<pallas_src>
import jax
import jax.numpy as jnp
import numpy as np
from jax import lax
from jax.experimental import pallas as pl
from jax.experimental.pallas import tpu as pltpu


# ----------------------------------------------------------------------------
# Pallas kernel
# ----------------------------------------------------------------------------
def _match_kernel(q_ref, m_ref, d_ref, w_ref, o_ref):
    """One grid step handles TB batch rows, natural (row-major) layouts.

    q_ref : (TB, S, H)  encoder last_hidden_state (compute dtype, e.g. bf16)
    m_ref : (TB, 1, S)  pre-normalised attention mask (f32): mask / sum(mask)
    d_ref : (TB, D, H)  doc embeddings (compute dtype)
    w_ref : (4,  H, 2)  [0]=W_query, [1]=W_doc, [2]=W_sub, [3][0,:]=bias
    o_ref : (TB, D, 2)  logits (f32)
    """
    tb = q_ref.shape[0]

    # Single fused classifier slab (one DMA per grid step).
    wq = w_ref[0]                                     # (H, 2)
    wd = w_ref[1]                                     # (H, 2)
    ws = w_ref[2]                                     # (H, 2)
    bias = w_ref[3][0:1, :].astype(jnp.float32)       # (1, 2)

    def body(i, carry):
        q = q_ref[i]                                  # (S, H)
        m = m_ref[i]                                  # (1, S) f32
        d = d_ref[i]                                  # (D, H)

        # Masked mean pool as one dot against the pre-normalised mask:
        # no in-kernel reduction, no divide.
        mean = jnp.dot(m, q.astype(jnp.float32),
                       preferred_element_type=jnp.float32)       # (1, H) f32

        # |mean - doc| in f32 (v5e VPU has no bf16 elementwise path).
        sub = jnp.abs(mean - d.astype(jnp.float32))               # (D, H) f32

        # concat([mean, doc, |mean-doc|]) @ W + b, split by concat slot.
        # The query slot is a (1,2) row broadcast over the doc axis.
        q_row = jnp.dot(mean, wq.astype(jnp.float32),
                        preferred_element_type=jnp.float32) + bias  # (1, 2)
        logits = (jnp.dot(d, wd, preferred_element_type=jnp.float32)
                  + jnp.dot(sub.astype(d.dtype), ws,
                            preferred_element_type=jnp.float32)
                  + q_row)                                          # (D, 2)
        o_ref[i] = logits.astype(o_ref.dtype)
        return carry

    lax.fori_loop(0, tb, body, None, unroll=True)


# ----------------------------------------------------------------------------
# Chip-aware tiling helpers
# ----------------------------------------------------------------------------
def _vmem_capacity_bytes():
    try:
        return int(pltpu.get_tpu_info().vmem_capacity_bytes)
    except Exception:
        return 64 * 1024 * 1024       # conservative: v7x physical VMEM per TC


def _tensorcores_per_chip():
    """Best-effort: v7x has 2 TensorCores sharing the grid under
    dimension_semantics=('parallel',); v5e/v6e have 1."""
    try:
        kind = jax.devices()[0].device_kind.lower()
    except Exception:
        return 1
    return 2 if "v7" in kind else 1


def _pick_batch_block(batch, max_tb, multi_core):
    """Largest divisor of `batch` that fits the VMEM budget; on dual-TC chips
    prefer an even number of grid steps so both cores get equal work."""
    divisors = [t for t in range(1, batch + 1)
                if batch % t == 0 and t <= max_tb]
    if not divisors:
        return 1
    if multi_core:
        even = [t for t in divisors if (batch // t) % 2 == 0]
        if even:
            return max(even)          # >= 2 grid steps, evenly split
    return max(divisors)              # single TC: fewest, fattest grid steps


# ----------------------------------------------------------------------------
# Wrapper
# ----------------------------------------------------------------------------
def sentence_transformer_forward(query_hidden, query_attention_mask,
                                 doc_embeddings, clf_w, clf_b,
                                 *, batch_block=None,
                                 compute_dtype=jnp.bfloat16):
    """
    query_hidden:         (B, S, H)  encoder last_hidden_state
    query_attention_mask: (B, S)     0/1 mask (int or float)
    doc_embeddings:       (B, D, H)
    clf_w:                (3H, 2)
    clf_b:                (2,)
    returns:              (B, D, 2)  float32 logits
    """
    B, S, H = query_hidden.shape
    D = doc_embeddings.shape[1]
    assert clf_w.shape == (3 * H, 2) and clf_b.shape == (2,)
    # NOTE: for deployment H should be a multiple of 128 (ernie-3.0's H=768
    # is); the demo H=32 under-fills lanes but stays correct.

    # Natural layouts, bf16 on the wire: NO HBM transpose of the big tensors.
    q = query_hidden.astype(compute_dtype)                  # (B, S, H)
    d = doc_embeddings.astype(compute_dtype)                # (B, D, H)

    # Pre-normalised mask; clamped denominator -> finite logits for all-zero
    # mask rows (PyTorch reference would produce NaN/Inf there).
    mask = query_attention_mask.astype(jnp.float32)          # (B, S)
    denom = jnp.maximum(jnp.sum(mask, axis=1, keepdims=True), 1e-9)
    m_norm = (mask / denom)[:, None, :]                       # (B, 1, S) f32

    # One fused classifier slab: [Wq, Wd, Ws, bias-row].
    w = clf_w.astype(compute_dtype).reshape(3, H, 2)
    b_slab = jnp.zeros((1, H, 2), compute_dtype).at[0, 0, :].set(
        clf_b.astype(compute_dtype))
    w_all = jnp.concatenate([w, b_slab], axis=0)              # (4, H, 2)

    # Chip-aware batch rows per grid step + explicit VMEM limit with headroom.
    itemsize = jnp.dtype(compute_dtype).itemsize
    vmem_limit = int(_vmem_capacity_bytes() * 0.75)
    per_row = 2 * (S * H * itemsize          # query block (double-buffered)
                   + D * H * itemsize        # doc block
                   + S * 4                   # mask block (f32)
                   + D * 2 * 4)              # output block (f32)
    block_budget = int(vmem_limit * 0.7) - 2 * (4 * H * 2 * itemsize)
    max_tb = max(1, block_budget // max(per_row, 1))
    if batch_block is not None:
        bb = max(1, int(batch_block))
        tb = max(t for t in range(1, B + 1) if B % t == 0 and t <= bb)
    else:
        tb = _pick_batch_block(B, max_tb, _tensorcores_per_chip() > 1)

    grid = (B // tb,)

    out = pl.pallas_call(
        _match_kernel,
        out_shape=jax.ShapeDtypeStruct((B, D, 2), jnp.float32),
        grid=grid,
        in_specs=[
            pl.BlockSpec((tb, S, H), lambda i: (i, 0, 0)),    # query hidden
            pl.BlockSpec((tb, 1, S), lambda i: (i, 0, 0)),    # normalised mask
            pl.BlockSpec((tb, D, H), lambda i: (i, 0, 0)),    # doc embeddings
            pl.BlockSpec((4, H, 2), lambda i: (0, 0, 0)),     # fused classifier
        ],
        out_specs=pl.BlockSpec((tb, D, 2), lambda i: (i, 0, 0)),
        compiler_params=pltpu.CompilerParams(
            dimension_semantics=("parallel",),
            vmem_limit_bytes=vmem_limit),
    )(q, m_norm, d, w_all)
    return out


# ----------------------------------------------------------------------------
# Tiny deterministic synthetic encoder (glue, plain JAX).
# TODO(synk): the real ernie-3.0 backbone is an external pretrained model; a
# small embedding + dense stand-in produces last_hidden_state here.
# ----------------------------------------------------------------------------
def make_encoder_params(key, vocab, n_types, max_seq, hidden):
    k1, k2, k3, k4 = jax.random.split(key, 4)
    return dict(
        tok_emb=0.02 * jax.random.normal(k1, (vocab, hidden), jnp.float32),
        type_emb=0.02 * jax.random.normal(k2, (n_types, hidden), jnp.float32),
        pos_emb=0.02 * jax.random.normal(k3, (max_seq, hidden), jnp.float32),
        dense_w=0.05 * jax.random.normal(k4, (hidden, hidden), jnp.float32),
        dense_b=jnp.zeros((hidden,), jnp.float32),
    )


def tiny_encoder(params, input_ids, token_type_ids, attention_mask):
    S = input_ids.shape[1]
    h = (params["tok_emb"][input_ids]
         + params["type_emb"][token_type_ids]
         + params["pos_emb"][jnp.arange(S)][None, :, :])
    h = jnp.tanh(h @ params["dense_w"] + params["dense_b"])
    return h  # (B, S, H) "last_hidden_state"


def forward_reference(query_hidden, mask, docs, W, b):
    """Faithful f32 reference of the PyTorch forward (steps 2-4)."""
    query_hidden = query_hidden.astype(jnp.float32)
    docs = docs.astype(jnp.float32)
    W = W.astype(jnp.float32)
    b = b.astype(jnp.float32)
    m = mask.astype(jnp.float32)[..., None]
    qe = query_hidden * m
    mean = qe.sum(axis=1) / m.sum(axis=1)
    mean_rep = jnp.repeat(mean[:, None, :], docs.shape[1], axis=1)
    sub = jnp.abs(mean_rep - docs)
    concat = jnp.concatenate([mean_rep, docs, sub], axis=-1)
    return concat @ W + b


if __name__ == "__main__":
    B, S, H, D = 2, 8, 32, 8      # batch, seq_len, hidden, num doc embeddings
    VOCAB, NTYPES = 100, 2

    key = jax.random.PRNGKey(0)
    k_enc, k_ids, k_typ, k_doc, k_w, k_b = jax.random.split(key, 6)

    enc_params = make_encoder_params(k_enc, VOCAB, NTYPES, S, H)

    query_input_ids = jax.random.randint(k_ids, (B, S), 0, VOCAB)
    query_token_type_ids = jax.random.randint(k_typ, (B, S), 0, NTYPES)
    lengths = jnp.array([5, 8], dtype=jnp.int32)
    query_attention_mask = (jnp.arange(S)[None, :] < lengths[:, None]).astype(jnp.int32)

    doc_embeddings = jax.random.normal(k_doc, (B, D, H), jnp.float32)

    # classifier: nn.Linear(3*H, 2)
    clf_w = 0.02 * jax.random.normal(k_w, (3 * H, 2), jnp.float32)
    clf_b = 0.01 * jax.random.normal(k_b, (2,), jnp.float32)

    # encoder (glue, plain JAX)
    query_hidden = tiny_encoder(enc_params, query_input_ids,
                                query_token_type_ids, query_attention_mask)

    # bf16 the big tensors / weights once, so kernel and reference consume the
    # exact same (bf16-rounded) values; the kernel accumulates in f32.
    qh_bf = query_hidden.astype(jnp.bfloat16)
    doc_bf = doc_embeddings.astype(jnp.bfloat16)
    w_bf = clf_w.astype(jnp.bfloat16)
    b_bf = clf_b.astype(jnp.bfloat16)

    # Pallas kernel: masked mean pool + |q - d| + classifier matmul (fused)
    logits = sentence_transformer_forward(qh_bf, query_attention_mask,
                                          doc_bf, w_bf, b_bf)
    logits = jax.block_until_ready(logits)

    ref = forward_reference(qh_bf, query_attention_mask, doc_bf, w_bf, b_bf)
    # bf16 compute on the |q-d| branch + f32 accumulation: a few e-4 typical
    # deviation from the pure-f32 reference; 5e-3 gives comfortable margin.
    np.testing.assert_allclose(np.asarray(logits), np.asarray(ref),
                               rtol=5e-3, atol=5e-3)
    assert logits.shape == (B, D, 2)
    print("KERNEL_OK")
</pallas_src>

<mosaic_0001>
module attributes {stable_mosaic.version = 11 : i64} {
  func.func @_match_kernel(%arg0: i32, %arg1: memref<2x8x32xbf16, #tpu.memory_space<vmem>>, %arg2: memref<2x1x8xf32, #tpu.memory_space<vmem>>, %arg3: memref<2x8x32xbf16, #tpu.memory_space<vmem>>, %arg4: memref<4x32x2xbf16, #tpu.memory_space<vmem>>, %arg5: memref<2x8x2xf32, #tpu.memory_space<vmem>>) attributes {dimension_semantics = [#tpu.dimension_semantics<parallel>], iteration_bounds = array<i64: 1>, scalar_prefetch = 0 : i64, scratch_operands = 0 : i64, tpu.core_type = #tpu.core_type<tc>, window_params = [{transform_indices = @transform_0, window_bounds = array<i64: 2, 8, 32>}, {transform_indices = @transform_1, window_bounds = array<i64: 2, 1, 8>}, {transform_indices = @transform_2, window_bounds = array<i64: 2, 8, 32>}, {pipeline_mode = #tpu.pipeline_mode<synchronous>, transform_indices = @transform_3, window_bounds = array<i64: 4, 32, 2>}, {transform_indices = @transform_4, window_bounds = array<i64: 2, 8, 2>}]} {
    %c0 = arith.constant 0 : index
    %c0_0 = arith.constant 0 : index
    %c0_1 = arith.constant 0 : index
    %0 = vector.load %arg4[%c0, %c0_0, %c0_1] : memref<4x32x2xbf16, #tpu.memory_space<vmem>>, vector<1x32x2xbf16>
    %1 = vector.shape_cast %0 : vector<1x32x2xbf16> to vector<32x2xbf16>
    %c1 = arith.constant 1 : index
    %c0_2 = arith.constant 0 : index
    %c0_3 = arith.constant 0 : index
    %2 = vector.load %arg4[%c1, %c0_2, %c0_3] : memref<4x32x2xbf16, #tpu.memory_space<vmem>>, vector<1x32x2xbf16>
    %3 = vector.shape_cast %2 : vector<1x32x2xbf16> to vector<32x2xbf16>
    %c2 = arith.constant 2 : index
    %c0_4 = arith.constant 0 : index
    %c0_5 = arith.constant 0 : index
    %4 = vector.load %arg4[%c2, %c0_4, %c0_5] : memref<4x32x2xbf16, #tpu.memory_space<vmem>>, vector<1x32x2xbf16>
    %5 = vector.shape_cast %4 : vector<1x32x2xbf16> to vector<32x2xbf16>
    %c3 = arith.constant 3 : index
    %c0_6 = arith.constant 0 : index
    %c0_7 = arith.constant 0 : index
    %6 = vector.load %arg4[%c3, %c0_6, %c0_7] : memref<4x32x2xbf16, #tpu.memory_space<vmem>>, vector<1x32x2xbf16>
    %7 = vector.shape_cast %6 : vector<1x32x2xbf16> to vector<32x2xbf16>
    %8 = vector.extract_strided_slice %7 {offsets = [0, 0], sizes = [1, 2], strides = [1, 1]} : vector<32x2xbf16> to vector<1x2xbf16>
    %9 = arith.extf %8 : vector<1x2xbf16> to vector<1x2xf32>
    %c0_i32 = arith.constant 0 : i32
    %10 = arith.index_cast %c0_i32 : i32 to index
    %c0_8 = arith.constant 0 : index
    %c0_9 = arith.constant 0 : index
    %11 = vector.load %arg1[%10, %c0_8, %c0_9] : memref<2x8x32xbf16, #tpu.memory_space<vmem>>, vector<1x8x32xbf16>
    %12 = vector.shape_cast %11 : vector<1x8x32xbf16> to vector<8x32xbf16>
    %13 = arith.index_cast %c0_i32 : i32 to index
    %c0_10 = arith.constant 0 : index
    %c0_11 = arith.constant 0 : index
    %14 = vector.load %arg2[%13, %c0_10, %c0_11] : memref<2x1x8xf32, #tpu.memory_space<vmem>>, vector<1x1x8xf32>
    %15 = vector.shape_cast %14 : vector<1x1x8xf32> to vector<1x8xf32>
    %16 = arith.index_cast %c0_i32 : i32 to index
    %c0_12 = arith.constant 0 : index
    %c0_13 = arith.constant 0 : index
    %17 = vector.load %arg3[%16, %c0_12, %c0_13] : memref<2x8x32xbf16, #tpu.memory_space<vmem>>, vector<1x8x32xbf16>
    %18 = vector.shape_cast %17 : vector<1x8x32xbf16> to vector<8x32xbf16>
    %19 = arith.extf %12 : vector<8x32xbf16> to vector<8x32xf32>
    %cst = arith.constant dense<0.000000e+00> : vector<1x32xf32>
    %20 = tpu.matmul %15, %19, %cst {dimension_numbers = #tpu.dot_dimension_numbers<[1], [0], [0], [1], [0, 0, 1, 1], [], []>} : vector<1x8xf32>, vector<8x32xf32>, vector<1x32xf32> -> vector<1x32xf32>
    %21 = arith.extf %18 : vector<8x32xbf16> to vector<8x32xf32>
    %22 = vector.broadcast %20 : vector<1x32xf32> to vector<8x32xf32>
    %23 = arith.subf %22, %21 : vector<8x32xf32>
    %24 = math.absf %23 : vector<8x32xf32>
    %25 = arith.extf %1 : vector<32x2xbf16> to vector<32x2xf32>
    %cst_14 = arith.constant dense<0.000000e+00> : vector<1x2xf32>
    %26 = tpu.matmul %20, %25, %cst_14 {dimension_numbers = #tpu.dot_dimension_numbers<[1], [0], [0], [1], [0, 0, 1, 1], [], []>} : vector<1x32xf32>, vector<32x2xf32>, vector<1x2xf32> -> vector<1x2xf32>
    %27 = arith.addf %26, %9 : vector<1x2xf32>
    %cst_15 = arith.constant dense<0.000000e+00> : vector<8x2xf32>
    %28 = tpu.matmul %18, %3, %cst_15 {dimension_numbers = #tpu.dot_dimension_numbers<[1], [0], [0], [1], [0, 0, 1, 1], [], []>} : vector<8x32xbf16>, vector<32x2xbf16>, vector<8x2xf32> -> vector<8x2xf32>
    %29 = arith.truncf %24 : vector<8x32xf32> to vector<8x32xbf16>
    %cst_16 = arith.constant dense<0.000000e+00> : vector<8x2xf32>
    %30 = tpu.matmul %29, %5, %cst_16 {dimension_numbers = #tpu.dot_dimension_numbers<[1], [0], [0], [1], [0, 0, 1, 1], [], []>} : vector<8x32xbf16>, vector<32x2xbf16>, vector<8x2xf32> -> vector<8x2xf32>
    %31 = arith.addf %28, %30 : vector<8x2xf32>
    %32 = vector.broadcast %27 : vector<1x2xf32> to vector<8x2xf32>
    %33 = arith.addf %31, %32 : vector<8x2xf32>
    %34 = arith.index_cast %c0_i32 : i32 to index
    %c0_17 = arith.constant 0 : index
    %c0_18 = arith.constant 0 : index
    %35 = vector.load %arg5[%34, %c0_17, %c0_18] : memref<2x8x2xf32, #tpu.memory_space<vmem>>, vector<1x8x2xf32>
    %36 = vector.shape_cast %35 : vector<1x8x2xf32> to vector<8x2xf32>
    %37 = vector.shape_cast %33 : vector<8x2xf32> to vector<1x8x2xf32>
    tpu.vector_store %arg5[%34, %c0_17, %c0_18], %37 {strides = array<i32>} : memref<2x8x2xf32, #tpu.memory_space<vmem>>, vector<1x8x2xf32>,
    %c1_i32 = arith.constant 1 : i32
    %38 = arith.index_cast %c1_i32 : i32 to index
    %c0_19 = arith.constant 0 : index
    %c0_20 = arith.constant 0 : index
    %39 = vector.load %arg1[%38, %c0_19, %c0_20] : memref<2x8x32xbf16, #tpu.memory_space<vmem>>, vector<1x8x32xbf16>
    %40 = vector.shape_cast %39 : vector<1x8x32xbf16> to vector<8x32xbf16>
    %41 = arith.index_cast %c1_i32 : i32 to index
    %c0_21 = arith.constant 0 : index
    %c0_22 = arith.constant 0 : index
    %42 = vector.load %arg2[%41, %c0_21, %c0_22] : memref<2x1x8xf32, #tpu.memory_space<vmem>>, vector<1x1x8xf32>
    %43 = vector.shape_cast %42 : vector<1x1x8xf32> to vector<1x8xf32>
    %44 = arith.index_cast %c1_i32 : i32 to index
    %c0_23 = arith.constant 0 : index
    %c0_24 = arith.constant 0 : index
    %45 = vector.load %arg3[%44, %c0_23, %c0_24] : memref<2x8x32xbf16, #tpu.memory_space<vmem>>, vector<1x8x32xbf16>
    %46 = vector.shape_cast %45 : vector<1x8x32xbf16> to vector<8x32xbf16>
    %47 = arith.extf %40 : vector<8x32xbf16> to vector<8x32xf32>
    %cst_25 = arith.constant dense<0.000000e+00> : vector<1x32xf32>
    %48 = tpu.matmul %43, %47, %cst_25 {dimension_numbers = #tpu.dot_dimension_numbers<[1], [0], [0], [1], [0, 0, 1, 1], [], []>} : vector<1x8xf32>, vector<8x32xf32>, vector<1x32xf32> -> vector<1x32xf32>
    %49 = arith.extf %46 : vector<8x32xbf16> to vector<8x32xf32>
    %50 = vector.broadcast %48 : vector<1x32xf32> to vector<8x32xf32>
    %51 = arith.subf %50, %49 : vector<8x32xf32>
    %52 = math.absf %51 : vector<8x32xf32>
    %53 = arith.extf %1 : vector<32x2xbf16> to vector<32x2xf32>
    %cst_26 = arith.constant dense<0.000000e+00> : vector<1x2xf32>
    %54 = tpu.matmul %48, %53, %cst_26 {dimension_numbers = #tpu.dot_dimension_numbers<[1], [0], [0], [1], [0, 0, 1, 1], [], []>} : vector<1x32xf32>, vector<32x2xf32>, vector<1x2xf32> -> vector<1x2xf32>
    %55 = arith.addf %54, %9 : vector<1x2xf32>
    %cst_27 = arith.constant dense<0.000000e+00> : vector<8x2xf32>
    %56 = tpu.matmul %46, %3, %cst_27 {dimension_numbers = #tpu.dot_dimension_numbers<[1], [0], [0], [1], [0, 0, 1, 1], [], []>} : vector<8x32xbf16>, vector<32x2xbf16>, vector<8x2xf32> -> vector<8x2xf32>
    %57 = arith.truncf %52 : vector<8x32xf32> to vector<8x32xbf16>
    %cst_28 = arith.constant dense<0.000000e+00> : vector<8x2xf32>
    %58 = tpu.matmul %57, %5, %cst_28 {dimension_numbers = #tpu.dot_dimension_numbers<[1], [0], [0], [1], [0, 0, 1, 1], [], []>} : vector<8x32xbf16>, vector<32x2xbf16>, vector<8x2xf32> -> vector<8x2xf32>
    %59 = arith.addf %56, %58 : vector<8x2xf32>
    %60 = vector.broadcast %55 : vector<1x2xf32> to vector<8x2xf32>
    %61 = arith.addf %59, %60 : vector<8x2xf32>
    %62 = arith.index_cast %c1_i32 : i32 to index
    %c0_29 = arith.constant 0 : index
    %c0_30 = arith.constant 0 : index
    %63 = vector.load %arg5[%62, %c0_29, %c0_30] : memref<2x8x2xf32, #tpu.memory_space<vmem>>, vector<1x8x2xf32>
    %64 = vector.shape_cast %63 : vector<1x8x2xf32> to vector<8x2xf32>
    %65 = vector.shape_cast %61 : vector<8x2xf32> to vector<1x8x2xf32>
    tpu.vector_store %arg5[%62, %c0_29, %c0_30], %65 {strides = array<i32>} : memref<2x8x2xf32, #tpu.memory_space<vmem>>, vector<1x8x2xf32>,
    %c2_i32 = arith.constant 2 : i32
    return
  }
  func.func @transform_0(%arg0: i32) -> (i32, i32, i32) {
    %c0_i32 = arith.constant 0 : i32
    %c0_i32_0 = arith.constant 0 : i32
    %c0_i32_1 = arith.constant 0 : i32
    return %arg0, %c0_i32, %c0_i32_0 : i32, i32, i32
  }
  func.func @transform_1(%arg0: i32) -> (i32, i32, i32) {
    %c0_i32 = arith.constant 0 : i32
    %c0_i32_0 = arith.constant 0 : i32
    %c0_i32_1 = arith.constant 0 : i32
    return %arg0, %c0_i32, %c0_i32_0 : i32, i32, i32
  }
  func.func @transform_2(%arg0: i32) -> (i32, i32, i32) {
    %c0_i32 = arith.constant 0 : i32
    %c0_i32_0 = arith.constant 0 : i32
    %c0_i32_1 = arith.constant 0 : i32
    return %arg0, %c0_i32, %c0_i32_0 : i32, i32, i32
  }
  func.func @transform_3(%arg0: i32) -> (i32, i32, i32) {
    %c0_i32 = arith.constant 0 : i32
    %c0_i32_0 = arith.constant 0 : i32
    %c0_i32_1 = arith.constant 0 : i32
    %c0_i32_2 = arith.constant 0 : i32
    return %c0_i32, %c0_i32_0, %c0_i32_1 : i32, i32, i32
  }
  func.func @transform_4(%arg0: i32) -> (i32, i32, i32) {
    %c0_i32 = arith.constant 0 : i32
    %c0_i32_0 = arith.constant 0 : i32
    %c0_i32_1 = arith.constant 0 : i32
    return %arg0, %c0_i32, %c0_i32_0 : i32, i32, i32
  }
}

</mosaic_0001>

<bundles_post_ra>
// kernel: tpu_custom_call.1
= control target key start
LH: loop header
LB: loop body
LE: loop exit
PB: predicated region body
PF: predicated region fallthrough
CT: control target
= control target key end

     0   :  { %v704_v0 = vmov 0.0   ;;  %vm705_vm0 = vmmov 0   ;;  %vm39_vm1 = vcmask 64512   ;;  %v114_v12 = vlaneseq  ;;  %s823_s0 = inlined_call_operand.vmem [shape: bf16[2,8,32], index: 0, kind: input, shape index: {}]   ;;  %s824_s1 = inlined_call_operand.vmem [shape: f32[2,1,8], index: 1, kind: input, shape index: {}]   ;;  %s825_s3 = inlined_call_operand.vmem [shape: bf16[4,32,2], index: 3, kind: input, shape index: {}]   ;;  %s826_s2 = inlined_call_operand.vmem [shape: bf16[2,8,32], index: 2, kind: input, shape index: {}]   ;;  %s827_s4 = inlined_call_operand.vmem [shape: f32[2,8,2], index: 4, kind: output, shape index: {}]  }
   0x1   :  { %634 = vmatprep.subr.mxu0 %v704_v0  ;;  %v35_v1 = vld [vmem:[%s823_s0] sm:$0xff]   ;;  %636 = vmatprep.mubr.msk.f32.mxu0 %vm705_vm0, %v704_v0  ;;  %v607_v4 = vld [vmem:[%s825_s3 + $0x8] sm:$0xff]   ;;  %vm124_vm2 = vcmask 261120   ;;  %v701_v16 = vld [vmem:[%s825_s3 + $0x18] sm:$0xff]   ;;  %vm314_vm3 = vcmask 15360  }
   0x2   :  { %v38_v2 = vunpack.c.l.bf16 %v35_v1  ;;  %v36_v3 = vld [vmem:[%s824_s1] sm:$0x1]  ;;  %639 = vmatprep.subr.mxu1 %v704_v0  ;;  %647 = vmatprep.mubr.msk.f32.mxu1 %vm705_vm0, %v704_v0  ;;  %v605_v6 = vunpack.c.l.bf16 %v607_v4  ;;  %v606_v7 = vunpack.c.h.bf16 %v607_v4  ;;  %v700_v10 = vld [vmem:[%s825_s3 + $0x28] sm:$0xff]   ;;  %v115_v13 = vshrl.u32 %v114_v12, 7  ;;  %v703_v21 = vld [vmem:[%s825_s3 + $0x10] sm:$0xff]  }
   0x3   :  { %v600_v5 = vld [vmem:[%s825_s3] sm:$0xff]   ;;  %v322_v24 = vunpack.c.h.bf16 %v35_v1  ;;  %v582_v27 = vld [vmem:[%s825_s3 + $0x30] sm:$0xf] }
   0x4   :  { %635 = vmatpush3.msra.mxu0 %v38_v2  ;;  %640 = vmatpush3.msra.mxu1 %v606_v7  ;;  %v602_v8 = vunpack.c.h.bf16 %v600_v5  ;;  %v601_v9 = vunpack.c.l.bf16 %v600_v5  ;;  %v702_v11 = vld [vmem:[%s825_s3 + $0x20] sm:$0xff]   ;;  %v768_v15 = vsub.s32 0, %v115_v13  ;;  %v34_v29 = vunpack.c.l.bf16 %v582_v27 }
   0x5   :  { %637 = vmatmul.mubr.msk.f32.vlgmr.msra.gmra.mxu0 %vm39_vm1, %v36_v3  ;;  %641 = vmatprep.subr.mxu1 %v704_v0  ;;  %v37_v14 = vld [vmem:[%s826_s2] sm:$0xf]  ;;  %v593_v40 = vld [vmem:[%s826_s2 + $0x4] sm:$0xf] }
   0x6   :  { %650 = vmatprep.subr.bf16.mxu0 %v704_v0  ;;  %642 = vmatpush3.msra.mxu1 %v605_v6  ;;  %v113_v17 = vunpack.c.l.bf16 %v37_v14  ;;  %v592_v26 = vld [vmem:[%s824_s1 + $0x1] sm:$0x1]  ;;  %v396_v44 = vunpack.c.l.bf16 %v593_v40 }
   0x7   :  { %654 = vmatprep.mubr.msk.bf16.mxu0 %vm705_vm0, %v704_v0  ;;  %643 = vmatprep.subr.mxu1 %v704_v0 }
   0x8   :  { %644 = vmatpush3.msra.mxu1 %v602_v8  ;;  %651 = vmatpush3.bf16.msra.mxu0 %v700_v10 }
   0x9   :  { %645 = vmatprep.subr.mxu1 %v704_v0  ;;  %652 = vmatprep.subr.bf16.mxu0 %v704_v0 }
   0xa   :  { %646 = vmatpush3.msra.mxu1 %v601_v9 }
   0xb   :  { %658 = vmatprep.subr.bf16.mxu1 %v704_v0 }
   0xc   :  { %653 = vmatpush3.bf16.msra.mxu0 %v702_v11 }
   0xd   :  { %666 = vmatprep.subr.mxu0 %v704_v0 }
  0xc5   :  { %v109_v18 = vpop.f32.mrf.mxu0 }
  0xc6   :  { %v117_v19 = vrot.slane %v109_v18, %v768_v15  ;;  %648 = vmatmul.mubr.msk.f32.vlgmr.msra.gmra.mxu1 %vm124_vm2, %v109_v18 }
  0xc7   :  { %v638_v20 = vpop.f32.mrf.mxu0  ;;  %659 = vmatpush3.bf16.msra.mxu1 %v701_v16  ;;  %662 = vmatprep.mubr.msk.bf16.mxu1 %vm705_vm0, %v704_v0 }
  0xc8   :  { %v118_v22 = vsub.f32 %v117_v19, %v113_v17  ;;  %660 = vmatprep.subr.bf16.mxu1 %v704_v0 }
  0xca   :  { %v119_v23 = vand.u32 2147483647, %v118_v22 }
  0xcb   :  { %661 = vmatpush3.bf16.msra.mxu1 %v703_v21 }
  0xcc   :  { %v198_v25 = vpack.c.bf16 %v119_v23, %v119_v23  ;;  %671 = vmatprep.subr.mxu1 %v704_v0 }
  0xce   :  { %655 = vmatmul.mubr.msk.bf16.vlgmr.msra.gmra.mxu0 %vm124_vm2, %v198_v25  ;;  %663 = vmatmul.mubr.msk.bf16.vlgmr.msra.gmra.mxu1 %vm124_vm2, %v37_v14 }
  0xcf   :  { %667 = vmatpush3.msra.mxu0 %v322_v24  ;;  %668 = vmatprep.mubr.msk.f32.mxu0 %vm705_vm0, %v704_v0 }
  0xd0   :  { %672 = vmatpush3.msra.mxu1 %v606_v7  ;;  %679 = vmatprep.mubr.msk.f32.mxu1 %vm705_vm0, %v704_v0 }
  0xd1   :  { %673 = vmatprep.subr.mxu1 %v704_v0  ;;  %682 = vmatprep.subr.bf16.mxu0 %v704_v0 }
  0xd2   :  { %674 = vmatpush3.msra.mxu1 %v605_v6 }
  0xd3   :  { %675 = vmatprep.subr.mxu1 %v704_v0 }
  0xd4   :  { %676 = vmatpush3.msra.mxu1 %v602_v8 }
  0xd5   :  { %677 = vmatprep.subr.mxu1 %v704_v0 }
  0xd6   :  { %669 = vmatmul.mubr.msk.f32.vlgmr.msra.gmra.mxu0 %vm39_vm1, %v592_v26  ;;  %678 = vmatpush3.msra.mxu1 %v601_v9 }
  0xd7   :  { %690 = vmatprep.subr.bf16.mxu1 %v704_v0  ;;  %683 = vmatpush3.bf16.msra.mxu0 %v700_v10 }
  0xd8   :  { %684 = vmatprep.subr.bf16.mxu0 %v704_v0  ;;  %686 = vmatprep.mubr.msk.bf16.mxu0 %vm705_vm0, %v704_v0 }
  0xdb   :  { %685 = vmatpush3.bf16.msra.mxu0 %v702_v11 }
 0x186   :  { %v194_v28 = vpop.f32.mrf.mxu1 }
 0x187   :  { %v195_v31 = vadd.f32 %v194_v28, %v34_v29 }
 0x188   :  { %v649_v30 = vpop.f32.mrf.mxu1 }
 0x189   :  { %v312_v34 = vrot.slane %v195_v31, %v768_v15 }
 0x18e   :  { %v248_v32 = vpop.f32.mrf.mxu0  ;;  %v303_v33 = vpop.f32.mrf.mxu1 }
 0x18f   :  { %v304_v35 = vadd.f32 %v303_v33, %v248_v32 }
 0x190   :  { %v656_v36 = vpop.f32.mrf.mxu0  ;;  %v664_v37 = vpop.f32.mrf.mxu1 }
 0x191   :  { %v313_v38 = vadd.f32 %v312_v34, %v304_v35 }
 0x192   :  { %v251_v39 = vpop.f32.mrf.mxu0  ;;  %v306_v41 = vpop.f32.mrf.mxu1 }
 0x193   :  { %315 = vst.msk [vmem:[%s827_s4] sm:$0xff] %vm314_vm3, %v313_v38 }
 0x194   :  { %v657_v42 = vpop.f32.mrf.mxu0  ;;  %v665_v43 = vpop.f32.mrf.mxu1 }
 0x196   :  { %v392_v45 = vpop.f32.mrf.mxu0 }
 0x197   :  { %v400_v46 = vrot.slane %v392_v45, %v768_v15  ;;  %680 = vmatmul.mubr.msk.f32.vlgmr.msra.gmra.mxu1 %vm124_vm2, %v392_v45 }
 0x198   :  { %691 = vmatpush3.bf16.msra.mxu1 %v701_v16  ;;  %v670_v47 = vpop.f32.mrf.mxu0  ;;  %694 = vmatprep.mubr.msk.bf16.mxu1 %vm705_vm0, %v704_v0 }
 0x199   :  { %v401_v48 = vsub.f32 %v400_v46, %v396_v44  ;;  %692 = vmatprep.subr.bf16.mxu1 %v704_v0 }
 0x19b   :  { %v402_v49 = vand.u32 2147483647, %v401_v48 }
 0x19c   :  { %693 = vmatpush3.bf16.msra.mxu1 %v703_v21 }
 0x19d   :  { %v476_v50 = vpack.c.bf16 %v402_v49, %v402_v49 }
 0x19f   :  { %695 = vmatmul.mubr.msk.bf16.vlgmr.msra.gmra.mxu1 %vm124_vm2, %v593_v40  ;;  %687 = vmatmul.mubr.msk.bf16.vlgmr.msra.gmra.mxu0 %vm124_vm2, %v476_v50 }
 0x257   :  { %v472_v51 = vpop.f32.mrf.mxu1 }
 0x258   :  { %v473_v53 = vadd.f32 %v472_v51, %v34_v29 }
 0x259   :  { %v681_v52 = vpop.f32.mrf.mxu1 }
 0x25a   :  { %v566_v56 = vrot.slane %v473_v53, %v768_v15 }
 0x25f   :  { %v557_v54 = vpop.f32.mrf.mxu1  ;;  %v514_v55 = vpop.f32.mrf.mxu0 }
 0x260   :  { %v558_v57 = vadd.f32 %v557_v54, %v514_v55 }
 0x261   :  { %v696_v58 = vpop.f32.mrf.mxu1  ;;  %v688_v59 = vpop.f32.mrf.mxu0 }
 0x262   :  { %v567_v60 = vadd.f32 %v566_v56, %v558_v57 }
 0x263   :  { %v560_v61 = vpop.f32.mrf.mxu1  ;;  %v517_v62 = vpop.f32.mrf.mxu0 }
 0x264   :  { %598 = vst.msk [vmem:[%s827_s4 + $0x8] sm:$0xff] %vm314_vm3, %v567_v60 }
 0x265   :  { %v697_v63 = vpop.f32.mrf.mxu1  ;;  %v689_v0 = vpop.f32.mrf.mxu0 }

</bundles_post_ra>
